<compile_context>
chip_gen: v7x
topology: tpu7x:2x2x1
jax: 0.10.0
libtpu: 0.0.40
codegen_flags: <defaults>
</compile_context>

<pallas_src>
import jax
import jax.numpy as jnp
from jax.experimental import pallas as pl
from jax.experimental.pallas import tpu as pltpu


def _round_up(a, b):
    return (a + b - 1) // b * b


# ---------------------------------------------------------------------------
# q_shift: pure spatial data movement -> pad/slice/concat on the NHWC view.
# (Kept as wrapper-side JAX glue; it is data movement, not compute.)
# TODO(synk): optionally fold q_shift into the kernel with a halo'd token
#             window when C is small enough for the op to be memory-bound.
# ---------------------------------------------------------------------------
def q_shift_jax(x, shift_pixel, gamma, patch_resolution):
    """x: (B, N, C), N = H*W. Returns shifted (B, N, C)."""
    B, N, C = x.shape
    H, W = patch_resolution
    s = shift_pixel
    g = int(C * gamma)
    img = x.reshape(B, H, W, C)
    parts = [
        # group 0: shift right along W
        jnp.pad(img[:, :, : W - s, 0:g], ((0, 0), (0, 0), (s, 0), (0, 0))),
        # group 1: shift left along W
        jnp.pad(img[:, :, s:, g:2 * g], ((0, 0), (0, 0), (0, s), (0, 0))),
        # group 2: shift down along H
        jnp.pad(img[:, : H - s, :, 2 * g:3 * g], ((0, 0), (s, 0), (0, 0), (0, 0))),
        # group 3: shift up along H
        jnp.pad(img[:, s:, :, 3 * g:4 * g], ((0, 0), (0, s), (0, 0), (0, 0))),
        # group 4: identity
        img[:, :, :, 4 * g:],
    ]
    out = jnp.concatenate(parts, axis=-1)
    return out.reshape(B, N, C)


def q_shift_reference(x, shift_pixel, gamma, patch_resolution):
    """Direct port of the torch scatter-style q_shift (reference only)."""
    B, N, C = x.shape
    H, W = patch_resolution
    img = jnp.transpose(x, (0, 2, 1)).reshape(B, C, H, W)
    g = int(C * gamma)
    s = shift_pixel
    out = jnp.zeros_like(img)
    out = out.at[:, 0:g, :, s:].set(img[:, 0:g, :, : W - s])
    out = out.at[:, g:2 * g, :, : W - s].set(img[:, g:2 * g, :, s:])
    out = out.at[:, 2 * g:3 * g, s:, :].set(img[:, 2 * g:3 * g, : H - s, :])
    out = out.at[:, 3 * g:4 * g, : H - s, :].set(img[:, 3 * g:4 * g, s:, :])
    out = out.at[:, 4 * g:, :, :].set(img[:, 4 * g:, :, :])
    return jnp.transpose(out.reshape(B, C, N), (0, 2, 1))


# ---------------------------------------------------------------------------
# Pallas kernel: fused token-mix -> key matmul -> relu^2 -> LayerNorm ->
# value matmul, gated by sigmoid(receptance matmul).  Row-tiled over tokens.
# ---------------------------------------------------------------------------
def _channel_mix_kernel(x_ref, xx_ref, mk_ref, mr_ref,
                        wk_ref, wv_ref, wr_ref, lnw_ref, lnb_ref, o_ref):
    x = x_ref[...].astype(jnp.float32)        # (Tm, C)
    xx = xx_ref[...].astype(jnp.float32)      # (Tm, C)
    mk = mk_ref[...]                          # (1, C) f32
    mr = mr_ref[...]                          # (1, C) f32

    # fused token mixing (VPU FMAs: free filler under MXU-bound matmuls)
    xk = (x * mk + xx * (1.0 - mk)).astype(jnp.bfloat16)
    xr = (x * mr + xx * (1.0 - mr)).astype(jnp.bfloat16)

    # key: (Tm, C) @ (C, Hsz) -> (Tm, Hsz), bf16 operands, f32 accumulation
    k = jnp.dot(xk, wk_ref[...], preferred_element_type=jnp.float32)
    k = jnp.maximum(k, 0.0)
    k = k * k                                 # relu^2, f32

    # LayerNorm over hidden axis (torch default eps=1e-5), f32
    mean = jnp.mean(k, axis=-1, keepdims=True)
    cent = k - mean
    var = jnp.mean(cent * cent, axis=-1, keepdims=True)
    k = cent * jax.lax.rsqrt(var + 1e-5)
    k = k * lnw_ref[...] + lnb_ref[...]

    # value: (Tm, Hsz) @ (Hsz, C) -> (Tm, C)
    kv = jnp.dot(k.astype(jnp.bfloat16), wv_ref[...],
                 preferred_element_type=jnp.float32)

    # receptance gate: sigmoid((Tm, C) @ (C, C))  (sigmoid -> EUP slot)
    r = jax.nn.sigmoid(jnp.dot(xr, wr_ref[...],
                               preferred_element_type=jnp.float32))

    o_ref[...] = (r * kv).astype(o_ref.dtype)


# ---------------------------------------------------------------------------
# VMEM sizing against the *actual* per-core capacity.
# ---------------------------------------------------------------------------
def _vmem_cap_bytes():
    try:
        return int(pltpu.get_tpu_info().vmem_capacity_bytes)
    except Exception:
        return 64 << 20  # conservative: v7x per-TensorCore capacity


def _vmem_need_bytes(tile_rows, C, hidden, out_bytes):
    weights = (C * hidden + hidden * C + C * C) * 2            # bf16, single copy
    consts = (2 * C + 2 * hidden) * 4                          # mix + LN params, f32
    io = 2 * (2 * tile_rows * C * 2) + 2 * tile_rows * C * out_bytes  # dbl-buf x, xx, out
    inter = tile_rows * hidden * 4 + 4 * tile_rows * C * 4            # k + f32 temps
    return weights + consts + io + inter


def _build_channel_mix_call(BN_pad, C, hidden, tile_rows, out_dtype):
    row_spec = pl.BlockSpec((tile_rows, C), lambda i: (i, 0))
    # Index-invariant operands: whole array resident in VMEM (single copy).
    vmem_spec = pl.BlockSpec(memory_space=pltpu.MemorySpace.VMEM)

    out_bytes = jnp.dtype(out_dtype).itemsize
    need = _vmem_need_bytes(tile_rows, C, hidden, out_bytes)
    cap = _vmem_cap_bytes()
    vmem_limit = min(max(int(1.25 * need) + (4 << 20), 32 << 20), cap - (8 << 20))

    cost = pl.CostEstimate(
        flops=2 * BN_pad * (2 * C * hidden + C * C),
        transcendentals=BN_pad * (C + hidden),
        bytes_accessed=(2 * BN_pad * C * 2 + BN_pad * C * out_bytes
                        + (2 * C * hidden + C * C) * 2
                        + (2 * C + 2 * hidden) * 4),
    )

    return pl.pallas_call(
        _channel_mix_kernel,
        out_shape=jax.ShapeDtypeStruct((BN_pad, C), out_dtype),
        grid_spec=pltpu.PrefetchScalarGridSpec(
            num_scalar_prefetch=0,
            grid=(BN_pad // tile_rows,),
            in_specs=[
                row_spec,        # x   (bf16 row tile)
                row_spec,        # xx  (bf16 row tile)
                vmem_spec,       # mix_k (1, C) f32
                vmem_spec,       # mix_r (1, C) f32
                vmem_spec,       # key weight^T      (C, hidden) bf16
                vmem_spec,       # value weight^T    (hidden, C) bf16
                vmem_spec,       # receptance w^T    (C, C) bf16
                vmem_spec,       # LayerNorm weight  (1, hidden) f32
                vmem_spec,       # LayerNorm bias    (1, hidden) f32
            ],
            out_specs=row_spec,
        ),
        compiler_params=pltpu.CompilerParams(
            dimension_semantics=("parallel",),   # megacore shards the row axis
            vmem_limit_bytes=vmem_limit,
        ),
        cost_estimate=cost,
    )


def vrwkv_channel_mix(x, params, patch_resolution,
                      shift_pixel=1, channel_gamma=1 / 4,
                      tile_rows=512, out_dtype=None):
    """x: (B, N, C). Returns (B, N, C) in out_dtype (default x.dtype)."""
    B, N, C = x.shape
    hidden = params["wk_t"].shape[1]
    out_dtype = x.dtype if out_dtype is None else out_dtype
    out_bytes = jnp.dtype(out_dtype).itemsize

    # --- wrapper glue: spatial shift only (token mixing is fused in-kernel)
    if shift_pixel > 0:
        xx = q_shift_jax(x, shift_pixel, channel_gamma, patch_resolution)
        mk = params["mix_k"].astype(jnp.float32)      # (1, C)
        mr = params["mix_r"].astype(jnp.float32)
    else:
        xx = x
        mk = jnp.ones((1, C), jnp.float32)            # mix=1 -> xk = xr = x
        mr = jnp.ones((1, C), jnp.float32)

    BN = B * N

    # Row tile: as large as allowed, multiple of 16 (bf16 sublane packing).
    eff_tile = min(tile_rows, _round_up(BN, 16))
    # Shrink if the VMEM footprint would exceed the real per-core budget.
    budget = _vmem_cap_bytes() - (8 << 20)
    while eff_tile > 16 and _vmem_need_bytes(eff_tile, C, hidden, out_bytes) > budget:
        eff_tile = max(16, _round_up(eff_tile // 2, 16))
    # Keep >= 2 grid steps when possible so v7x megacore can shard the axis.
    if _round_up(BN, eff_tile) // eff_tile < 2 and BN >= 32:
        eff_tile = _round_up((BN + 1) // 2, 16)
    BN_pad = _round_up(BN, eff_tile)

    x2 = x.reshape(BN, C).astype(jnp.bfloat16)
    xx2 = xx.reshape(BN, C).astype(jnp.bfloat16)
    if BN_pad != BN:
        pad = BN_pad - BN
        x2 = jnp.pad(x2, ((0, pad), (0, 0)))
        xx2 = jnp.pad(xx2, ((0, pad), (0, 0)))

    # Weights are already bf16 in params (cast once at init, not per call).
    args = (x2, xx2, mk, mr,
            params["wk_t"], params["wv_t"], params["wr_t"],
            params["ln_w"].astype(jnp.float32), params["ln_b"].astype(jnp.float32))

    out2 = _build_channel_mix_call(BN_pad, C, hidden, eff_tile, out_dtype)(*args)
    return out2[:BN].reshape(B, N, C)


# ---------------------------------------------------------------------------
# Plain-JAX reference (f32 activations) mirroring the PyTorch forward.
# ---------------------------------------------------------------------------
def reference_channel_mix(x, params, patch_resolution,
                          shift_pixel=1, channel_gamma=1 / 4):
    xx = q_shift_reference(x, shift_pixel, channel_gamma, patch_resolution)
    mk = params["mix_k"][None].astype(jnp.float32)
    mr = params["mix_r"][None].astype(jnp.float32)
    xk = x * mk + xx * (1 - mk)
    xr = x * mr + xx * (1 - mr)
    wk = params["wk_t"].astype(jnp.float32)
    wv = params["wv_t"].astype(jnp.float32)
    wr = params["wr_t"].astype(jnp.float32)
    k = xk @ wk
    k = jnp.square(jnp.maximum(k, 0.0))
    mean = jnp.mean(k, axis=-1, keepdims=True)
    var = jnp.mean((k - mean) ** 2, axis=-1, keepdims=True)
    k = (k - mean) / jnp.sqrt(var + 1e-5)
    k = k * params["ln_w"].astype(jnp.float32) + params["ln_b"].astype(jnp.float32)
    kv = k @ wv
    return jax.nn.sigmoid(xr @ wr) * kv


def init_params(key, n_embd, hidden_rate=2):
    hidden = hidden_rate * n_embd
    k1, k2, k3 = jax.random.split(key, 3)
    # nn.Linear(in, out, bias=False): weight (out, in); stored transposed & bf16
    # (cast ONCE here, not on every forward call).
    wk = jax.random.normal(k1, (hidden, n_embd), jnp.float32) * (1.0 / jnp.sqrt(n_embd))
    wv = jax.random.normal(k2, (n_embd, hidden), jnp.float32) * (1.0 / jnp.sqrt(hidden))
    wr = jax.random.normal(k3, (n_embd, n_embd), jnp.float32) * (1.0 / jnp.sqrt(n_embd))
    return {
        "mix_k": jnp.full((1, n_embd), 0.5, jnp.float32),   # spatial_mix_k (1,1,C) squeezed
        "mix_r": jnp.full((1, n_embd), 0.5, jnp.float32),
        "wk_t": wk.T.astype(jnp.bfloat16),                  # (C, hidden)
        "wv_t": wv.T.astype(jnp.bfloat16),                  # (hidden, C)
        "wr_t": wr.T.astype(jnp.bfloat16),                  # (C, C)
        "ln_w": jnp.ones((1, hidden), jnp.float32),         # torch LayerNorm defaults
        "ln_b": jnp.zeros((1, hidden), jnp.float32),
    }


if __name__ == "__main__":
    B, H, W = 2, 4, 4
    n_embd = 16
    hidden_rate = 2
    N = H * W

    key = jax.random.PRNGKey(0)
    kx, kp = jax.random.split(key)
    x = jax.random.normal(kx, (B, N, n_embd), jnp.float32)
    params = init_params(kp, n_embd, hidden_rate)

    out = vrwkv_channel_mix(x, params, (H, W))
    out = jax.block_until_ready(out)

    ref = reference_channel_mix(x, params, (H, W))
    assert out.shape == (B, N, n_embd)
    # bf16 matmul operands with f32 accumulation -> slightly looser tolerance.
    assert jnp.allclose(out, ref, atol=2e-2, rtol=2e-2), "mismatch vs reference"

    print("KERNEL_OK")
</pallas_src>

<mosaic_0001>
module attributes {stable_mosaic.version = 11 : i64} {
  func.func @_channel_mix_kernel(%arg0: i32, %arg1: memref<16x16xbf16, #tpu.memory_space<vmem>>, %arg2: memref<16x16xbf16, #tpu.memory_space<vmem>>, %arg3: memref<1x16xf32, #tpu.memory_space<vmem>>, %arg4: memref<1x16xf32, #tpu.memory_space<vmem>>, %arg5: memref<16x32xbf16, #tpu.memory_space<vmem>>, %arg6: memref<32x16xbf16, #tpu.memory_space<vmem>>, %arg7: memref<16x16xbf16, #tpu.memory_space<vmem>>, %arg8: memref<1x32xf32, #tpu.memory_space<vmem>>, %arg9: memref<1x32xf32, #tpu.memory_space<vmem>>, %arg10: memref<16x16xf32, #tpu.memory_space<vmem>>) attributes {dimension_semantics = [#tpu.dimension_semantics<parallel>], iteration_bounds = array<i64: 2>, scalar_prefetch = 0 : i64, scratch_operands = 0 : i64, tpu.core_type = #tpu.core_type<tc>, window_params = [{transform_indices = @transform_0, window_bounds = array<i64: 16, 16>}, {transform_indices = @transform_1, window_bounds = array<i64: 16, 16>}, {pipeline_mode = #tpu.pipeline_mode<synchronous>, transform_indices = @transform_2, window_bounds = array<i64: 1, 16>}, {pipeline_mode = #tpu.pipeline_mode<synchronous>, transform_indices = @transform_3, window_bounds = array<i64: 1, 16>}, {pipeline_mode = #tpu.pipeline_mode<synchronous>, transform_indices = @transform_4, window_bounds = array<i64: 16, 32>}, {pipeline_mode = #tpu.pipeline_mode<synchronous>, transform_indices = @transform_5, window_bounds = array<i64: 32, 16>}, {pipeline_mode = #tpu.pipeline_mode<synchronous>, transform_indices = @transform_6, window_bounds = array<i64: 16, 16>}, {pipeline_mode = #tpu.pipeline_mode<synchronous>, transform_indices = @transform_7, window_bounds = array<i64: 1, 32>}, {pipeline_mode = #tpu.pipeline_mode<synchronous>, transform_indices = @transform_8, window_bounds = array<i64: 1, 32>}, {transform_indices = @transform_9, window_bounds = array<i64: 16, 16>}]} {
    %c0 = arith.constant 0 : index
    %c0_0 = arith.constant 0 : index
    %0 = vector.load %arg1[%c0, %c0_0] : memref<16x16xbf16, #tpu.memory_space<vmem>>, vector<16x16xbf16>
    %1 = arith.extf %0 : vector<16x16xbf16> to vector<16x16xf32>
    %c0_1 = arith.constant 0 : index
    %c0_2 = arith.constant 0 : index
    %2 = vector.load %arg2[%c0_1, %c0_2] : memref<16x16xbf16, #tpu.memory_space<vmem>>, vector<16x16xbf16>
    %3 = arith.extf %2 : vector<16x16xbf16> to vector<16x16xf32>
    %c0_3 = arith.constant 0 : index
    %c0_4 = arith.constant 0 : index
    %4 = vector.load %arg3[%c0_3, %c0_4] : memref<1x16xf32, #tpu.memory_space<vmem>>, vector<1x16xf32>
    %c0_5 = arith.constant 0 : index
    %c0_6 = arith.constant 0 : index
    %5 = vector.load %arg4[%c0_5, %c0_6] : memref<1x16xf32, #tpu.memory_space<vmem>>, vector<1x16xf32>
    %6 = vector.broadcast %4 : vector<1x16xf32> to vector<16x16xf32>
    %7 = arith.mulf %1, %6 : vector<16x16xf32>
    %cst = arith.constant 1.000000e+00 : f32
    %8 = vector.broadcast %cst : f32 to vector<1x16xf32>
    %9 = arith.subf %8, %4 : vector<1x16xf32>
    %10 = vector.broadcast %9 : vector<1x16xf32> to vector<16x16xf32>
    %11 = arith.mulf %3, %10 : vector<16x16xf32>
    %12 = arith.addf %7, %11 : vector<16x16xf32>
    %13 = arith.truncf %12 : vector<16x16xf32> to vector<16x16xbf16>
    %14 = vector.broadcast %5 : vector<1x16xf32> to vector<16x16xf32>
    %15 = arith.mulf %1, %14 : vector<16x16xf32>
    %cst_7 = arith.constant 1.000000e+00 : f32
    %16 = vector.broadcast %cst_7 : f32 to vector<1x16xf32>
    %17 = arith.subf %16, %5 : vector<1x16xf32>
    %18 = vector.broadcast %17 : vector<1x16xf32> to vector<16x16xf32>
    %19 = arith.mulf %3, %18 : vector<16x16xf32>
    %20 = arith.addf %15, %19 : vector<16x16xf32>
    %21 = arith.truncf %20 : vector<16x16xf32> to vector<16x16xbf16>
    %c0_8 = arith.constant 0 : index
    %c0_9 = arith.constant 0 : index
    %22 = vector.load %arg5[%c0_8, %c0_9] : memref<16x32xbf16, #tpu.memory_space<vmem>>, vector<16x32xbf16>
    %cst_10 = arith.constant dense<0.000000e+00> : vector<16x32xf32>
    %23 = tpu.matmul %13, %22, %cst_10 {dimension_numbers = #tpu.dot_dimension_numbers<[1], [0], [0], [1], [0, 0, 1, 1], [], []>} : vector<16x16xbf16>, vector<16x32xbf16>, vector<16x32xf32> -> vector<16x32xf32>
    %cst_11 = arith.constant 0.000000e+00 : f32
    %24 = vector.broadcast %cst_11 : f32 to vector<16x32xf32>
    %25 = arith.maximumf %23, %24 : vector<16x32xf32>
    %26 = arith.mulf %25, %25 : vector<16x32xf32>
    %cst_12 = arith.constant dense<0.000000e+00> : vector<16xf32>
    %27 = vector.multi_reduction <add>, %26, %cst_12 [1] : vector<16x32xf32> to vector<16xf32>
    %28 = vector.shape_cast %27 : vector<16xf32> to vector<16x1xf32>
    %cst_13 = arith.constant 3.200000e+01 : f32
    %29 = vector.broadcast %cst_13 : f32 to vector<16x1xf32>
    %30 = arith.divf %28, %29 : vector<16x1xf32>
    %31 = vector.broadcast %30 : vector<16x1xf32> to vector<16x32xf32>
    %32 = arith.subf %26, %31 : vector<16x32xf32>
    %33 = arith.mulf %32, %32 : vector<16x32xf32>
    %cst_14 = arith.constant dense<0.000000e+00> : vector<16xf32>
    %34 = vector.multi_reduction <add>, %33, %cst_14 [1] : vector<16x32xf32> to vector<16xf32>
    %35 = vector.shape_cast %34 : vector<16xf32> to vector<16x1xf32>
    %cst_15 = arith.constant 3.200000e+01 : f32
    %36 = vector.broadcast %cst_15 : f32 to vector<16x1xf32>
    %37 = arith.divf %35, %36 : vector<16x1xf32>
    %cst_16 = arith.constant 9.99999974E-6 : f32
    %38 = vector.broadcast %cst_16 : f32 to vector<16x1xf32>
    %39 = arith.addf %37, %38 : vector<16x1xf32>
    %40 = math.rsqrt %39 : vector<16x1xf32>
    %41 = vector.broadcast %40 : vector<16x1xf32> to vector<16x32xf32>
    %42 = arith.mulf %32, %41 : vector<16x32xf32>
    %c0_17 = arith.constant 0 : index
    %c0_18 = arith.constant 0 : index
    %43 = vector.load %arg8[%c0_17, %c0_18] : memref<1x32xf32, #tpu.memory_space<vmem>>, vector<1x32xf32>
    %44 = vector.broadcast %43 : vector<1x32xf32> to vector<16x32xf32>
    %45 = arith.mulf %42, %44 : vector<16x32xf32>
    %c0_19 = arith.constant 0 : index
    %c0_20 = arith.constant 0 : index
    %46 = vector.load %arg9[%c0_19, %c0_20] : memref<1x32xf32, #tpu.memory_space<vmem>>, vector<1x32xf32>
    %47 = vector.broadcast %46 : vector<1x32xf32> to vector<16x32xf32>
    %48 = arith.addf %45, %47 : vector<16x32xf32>
    %49 = arith.truncf %48 : vector<16x32xf32> to vector<16x32xbf16>
    %c0_21 = arith.constant 0 : index
    %c0_22 = arith.constant 0 : index
    %50 = vector.load %arg6[%c0_21, %c0_22] : memref<32x16xbf16, #tpu.memory_space<vmem>>, vector<32x16xbf16>
    %cst_23 = arith.constant dense<0.000000e+00> : vector<16x16xf32>
    %51 = tpu.matmul %49, %50, %cst_23 {dimension_numbers = #tpu.dot_dimension_numbers<[1], [0], [0], [1], [0, 0, 1, 1], [], []>} : vector<16x32xbf16>, vector<32x16xbf16>, vector<16x16xf32> -> vector<16x16xf32>
    %c0_24 = arith.constant 0 : index
    %c0_25 = arith.constant 0 : index
    %52 = vector.load %arg7[%c0_24, %c0_25] : memref<16x16xbf16, #tpu.memory_space<vmem>>, vector<16x16xbf16>
    %cst_26 = arith.constant dense<0.000000e+00> : vector<16x16xf32>
    %53 = tpu.matmul %21, %52, %cst_26 {dimension_numbers = #tpu.dot_dimension_numbers<[1], [0], [0], [1], [0, 0, 1, 1], [], []>} : vector<16x16xbf16>, vector<16x16xbf16>, vector<16x16xf32> -> vector<16x16xf32>
    %54 = arith.negf %53 : vector<16x16xf32>
    %55 = math.exp %54 : vector<16x16xf32>
    %cst_27 = arith.constant 1.000000e+00 : f32
    %56 = vector.broadcast %cst_27 : f32 to vector<16x16xf32>
    %57 = arith.addf %56, %55 : vector<16x16xf32>
    %58 = arith.divf %56, %57 : vector<16x16xf32>
    %59 = arith.mulf %58, %51 : vector<16x16xf32>
    %c0_28 = arith.constant 0 : index
    %c0_29 = arith.constant 0 : index
    %60 = vector.load %arg10[%c0_28, %c0_29] : memref<16x16xf32, #tpu.memory_space<vmem>>, vector<16x16xf32>
    tpu.vector_store %arg10[%c0_28, %c0_29], %59 {strides = array<i32>} : memref<16x16xf32, #tpu.memory_space<vmem>>, vector<16x16xf32>,
    return
  }
  func.func @transform_0(%arg0: i32) -> (i32, i32) {
    %c0_i32 = arith.constant 0 : i32
    %c0_i32_0 = arith.constant 0 : i32
    return %arg0, %c0_i32 : i32, i32
  }
  func.func @transform_1(%arg0: i32) -> (i32, i32) {
    %c0_i32 = arith.constant 0 : i32
    %c0_i32_0 = arith.constant 0 : i32
    return %arg0, %c0_i32 : i32, i32
  }
  func.func @transform_2(%arg0: i32) -> (i32, i32) {
    %c0_i32 = arith.constant 0 : i32
    %c0_i32_0 = arith.constant 0 : i32
    %c0_i32_1 = arith.constant 0 : i32
    return %c0_i32, %c0_i32_0 : i32, i32
  }
  func.func @transform_3(%arg0: i32) -> (i32, i32) {
    %c0_i32 = arith.constant 0 : i32
    %c0_i32_0 = arith.constant 0 : i32
    %c0_i32_1 = arith.constant 0 : i32
    return %c0_i32, %c0_i32_0 : i32, i32
  }
  func.func @transform_4(%arg0: i32) -> (i32, i32) {
    %c0_i32 = arith.constant 0 : i32
    %c0_i32_0 = arith.constant 0 : i32
    %c0_i32_1 = arith.constant 0 : i32
    return %c0_i32, %c0_i32_0 : i32, i32
  }
  func.func @transform_5(%arg0: i32) -> (i32, i32) {
    %c0_i32 = arith.constant 0 : i32
    %c0_i32_0 = arith.constant 0 : i32
    %c0_i32_1 = arith.constant 0 : i32
    return %c0_i32, %c0_i32_0 : i32, i32
  }
  func.func @transform_6(%arg0: i32) -> (i32, i32) {
    %c0_i32 = arith.constant 0 : i32
    %c0_i32_0 = arith.constant 0 : i32
    %c0_i32_1 = arith.constant 0 : i32
    return %c0_i32, %c0_i32_0 : i32, i32
  }
  func.func @transform_7(%arg0: i32) -> (i32, i32) {
    %c0_i32 = arith.constant 0 : i32
    %c0_i32_0 = arith.constant 0 : i32
    %c0_i32_1 = arith.constant 0 : i32
    return %c0_i32, %c0_i32_0 : i32, i32
  }
  func.func @transform_8(%arg0: i32) -> (i32, i32) {
    %c0_i32 = arith.constant 0 : i32
    %c0_i32_0 = arith.constant 0 : i32
    %c0_i32_1 = arith.constant 0 : i32
    return %c0_i32, %c0_i32_0 : i32, i32
  }
  func.func @transform_9(%arg0: i32) -> (i32, i32) {
    %c0_i32 = arith.constant 0 : i32
    %c0_i32_0 = arith.constant 0 : i32
    return %arg0, %c0_i32 : i32, i32
  }
}

</mosaic_0001>

<bundles_post_ra>
// kernel: tpu_custom_call.1
= control target key start
LH: loop header
LB: loop body
LE: loop exit
PB: predicated region body
PF: predicated region fallthrough
CT: control target
= control target key end

     0   :  { %s854_s30 = smov 0   ;;  %s921_s0 = inlined_call_operand.vmem [shape: bf16[32,16], index: 0, kind: input, shape index: {}]   ;;  %s922_s1 = inlined_call_operand.vmem [shape: bf16[32,16], index: 1, kind: input, shape index: {}]   ;;  %s923_s2 = inlined_call_operand.vmem [shape: f32[1,16], index: 2, kind: input, shape index: {}]   ;;  %s924_s3 = inlined_call_operand.vmem [shape: f32[1,16], index: 3, kind: input, shape index: {}]   ;;  %s925_s4 = inlined_call_operand.vmem [shape: bf16[16,32], index: 4, kind: input, shape index: {}]   ;;  %s926_s5 = inlined_call_operand.vmem [shape: bf16[32,16], index: 5, kind: input, shape index: {}]   ;;  %s927_s6 = inlined_call_operand.vmem [shape: bf16[16,16], index: 6, kind: input, shape index: {}]   ;;  %s928_s7 = inlined_call_operand.vmem [shape: f32[1,32], index: 7, kind: input, shape index: {}]   ;;  %s929_s8 = inlined_call_operand.vmem [shape: f32[1,32], index: 8, kind: input, shape index: {}]   ;;  %s930_s9 = inlined_call_operand.vmem [shape: f32[32,16], index: 9, kind: output, shape index: {}]  }
   0x1 LB: > { %s709_s10 = sadd.s32 4294967295, %s800_s30   ;;  %p713_p0 = scmp.ge.s32.totalorder %s800_s30, 1  ;;  %s800_s30 = sphi %s854_s30, %s19_s30  }
   0x2   : > { %p299_p1 = scmp.lt.s32.totalorder %s800_s30, 3 }
   0x4   : > { %p300_p2 = pnand %p713_p0, %p299_p1 }
   0x5   : > { %v778_v0 = vld [vmem:[%s925_s4] sm:$0xff] (!%p300_p2)   ;;  %v370_v1 = vlaneseq (!%p300_p2)  ;;  %v802_v2 = vmov (!%p300_p2), 0.0   ;;  %s714_s13 = sshll.u32 (!%p300_p2), %s709_s10, 1  ;;  %vm803_vm0 = vmmov (!%p300_p2), 0   ;;  %vm417_vm1 = vcmask (!%p300_p2), 130048   ;;  %v781_v55 = vld [vmem:[%s926_s5 + $0x8] sm:$0xff] (!%p300_p2)  }
   0x6   : > { %303 = sbr.rel (%p300_p2) target bundleno = 778 (0x30a), region = 56  ;;  %748 = vmatprep.subr.bf16.mxu0 (!%p300_p2), %v802_v2  ;;  %v367_v3 = vld [vmem:[%s923_s2] sm:$0x1] (!%p300_p2)  ;;  %754 = vmatprep.subr.bf16.mxu1 (!%p300_p2), %v802_v2  ;;  %p341_p3 = scmp.lt.s32.totalorder (!%p300_p2), %s714_s13, 3  ;;  %vm466_vm2 = vcmask (!%p300_p2), 261120  }
   0x7   : > { %v368_v4 = vld [vmem:[%s924_s3] sm:$0x1] (!%p300_p2)  ;;  %749 = vmatpush3.bf16.msra.mxu0 (!%p300_p2), %v778_v0  ;;  %750 = vmatprep.mubr.msk.bf16.mxu0 (!%p300_p2), %vm803_vm0, %v802_v2  ;;  %v371_v5 = vshrl.u32 (!%p300_p2), %v370_v1, 7  ;;  %v377_v6 = vsub.f32 (!%p300_p2), 1.0, %v367_v3 }
   0x8   : > { %v397_v7 = vsub.f32 (!%p300_p2), 1.0, %v368_v4  ;;  %762 = vmatprep.subr.bf16.mxu0 (!%p300_p2), %v802_v2  ;;  %758 = vmatprep.mubr.msk.bf16.mxu1 (!%p300_p2), %vm803_vm0, %v802_v2  ;;  %v779_v40 = vld [vmem:[%s927_s6] sm:$0xff] (!%p300_p2)  }
   0x9   : > { %v372_v8 = vsub.s32 (!%p300_p2), 0, %v371_v5  ;;  %v780_v54 = vld [vmem:[%s926_s5] sm:$0xff] (!%p300_p2)  }
   0xa   : > { %755 = vmatpush3.bf16.msra.mxu1 (!%p300_p2), %v780_v54  ;;  %v722_v5 = vld [vmem:[%s928_s7] ss:$0 sm:$0xff] (!%p300_p2) }
   0xb   : > { %v373_v9 = vrot.slane (!%p300_p2), %v367_v3, %v372_v8  ;;  %v382_v10 = vrot.slane (!%p300_p2), %v377_v6, %v372_v8  ;;  %v393_v13 = vrot.slane (!%p300_p2), %v368_v4, %v372_v8  ;;  %v402_v14 = vrot.slane (!%p300_p2), %v397_v7, %v372_v8  ;;  %756 = vmatprep.subr.bf16.mxu1 (!%p300_p2), %v802_v2  ;;  %v723_v8 = vld [vmem:[%s929_s8] ss:$0 sm:$0xff] (!%p300_p2) }
   0xd   : > { %s932_s13 = smov (!%p341_p3, %s714_s13), 3 }
   0xe   : > { %s715_s18 = sshll.u32 %s932_s13, 2  ;;  %757 = vmatpush3.bf16.msra.mxu1 %v781_v55  ;;  %s719_s16 = sshll.u32 %s932_s13, 3 }
   0xf   : > { %s344_s21 = scalar_lea.vmem %s921_s0, %s715_s18  ;;  %s350_s24 = scalar_lea.vmem %s922_s1, %s715_s18 }
  0x10   : > { %v734_v11 = vld [vmem:[%s344_s21] sm:$0xff]   ;;  %s356_s19 = scalar_lea.vmem %s930_s9, %s719_s16 }
  0x11   : > { %v738_v12 = vld [vmem:[%s350_s24] sm:$0xff]   ;;  %v735_v15 = vunpack.c.l.bf16 %v734_v11  ;;  %v736_v16 = vunpack.c.h.bf16 %v734_v11 }
  0x12   : > { %v739_v17 = vunpack.c.l.bf16 %v738_v12  ;;  %v740_v18 = vunpack.c.h.bf16 %v738_v12 }
  0x13   : > { %v375_v19 = vmul.f32 %v735_v15, %v373_v9  ;;  %v376_v20 = vmul.f32 %v736_v16, %v373_v9  ;;  %v395_v23 = vmul.f32 %v735_v15, %v393_v13  ;;  %v396_v24 = vmul.f32 %v736_v16, %v393_v13 }
  0x14   : > { %v384_v21 = vmul.f32 %v739_v17, %v382_v10  ;;  %v385_v22 = vmul.f32 %v740_v18, %v382_v10  ;;  %v404_v25 = vmul.f32 %v739_v17, %v402_v14  ;;  %v405_v26 = vmul.f32 %v740_v18, %v402_v14 }
  0x16   : > { %v386_v27 = vadd.f32 %v384_v21, %v375_v19  ;;  %v387_v28 = vadd.f32 %v385_v22, %v376_v20  ;;  %v406_v41 = vadd.f32 %v404_v25, %v395_v23  ;;  %v407_v42 = vadd.f32 %v405_v26, %v396_v24 }
  0x18   : > { %v388_v29 = vpack.c.bf16 %v387_v28, %v386_v27  ;;  %v408_v43 = vpack.c.bf16 %v407_v42, %v406_v41 }
  0x1a   : > { %751 = vmatmul.mubr.msk.bf16.vlgmr.msra.gmra.mrb[0].mxu0 %vm417_vm1, %v388_v29 }
  0x1b   : > { %764 = vmatprep.mubr.msk.bf16.mxu0 %vm803_vm0, %v802_v2  ;;  %763 = vmatpush3.bf16.msra.mxu0 %v779_v40 }
  0x22   : > { %765 = vmatmul.mubr.msk.bf16.vlgmr.msra.gmra.mrb[4].mxu0 %vm417_vm1, %v408_v43 }
  0xed   : > { %v455_v30 = vpop.f32.mrb[0].mxu0 }
  0xee   : > { %v462_v31 = vmax.f32 %v455_v30, 0.0  ;;  %v752_v32 = vpop.f32.mrb[1].mxu0 }
  0xef   : > { %v458_v33 = vpop.f32.mrb[2].mxu0 }
  0xf0   : > { %v464_v34 = vmul.f32 %v462_v31, %v462_v31  ;;  %v463_v35 = vmax.f32 %v458_v33, 0.0  ;;  %v753_v36 = vpop.f32.mrb[3].mxu0 }
  0xf2   : > { %v465_v37 = vmul.f32 %v463_v35, %v463_v35  ;;  %v467_v38 = vsel %vm466_vm2, %v464_v34, 0.0 }
  0xf3   : > { %468 = vadd.xlane.f32.xlu0 %v467_v38 }
  0xf4   : > { %v470_v39 = vsel %vm466_vm2, %v465_v37, 0.0 }
  0xf5   : > { %v618_v56 = vpop.f32.mrb[4].mxu0 }
  0xf6   : > { %v766_v57 = vpop.f32.mrb[5].mxu0  ;;  %v729_v13 = vmul.f32 -1.442695, %v618_v56 }
  0xf7   : > { %471 = vadd.xlane.f32.xlu0 %v470_v39  ;;  %v621_v58 = vpop.f32.mrb[6].mxu0 }
  0xf8   : > { %v767_v59 = vpop.f32.mrb[7].mxu0  ;;  %v730_v14 = vmul.f32 -1.442695, %v621_v58 }
 0x180   : > { %v469_v44 = vpop.xlane.xlu0 %468 }
 0x181   : > { %v474_v45 = vmul.f32 0.03125, %v469_v44 }
 0x183   : > { %v476_v46 = vsub.f32 %v464_v34, %v474_v45 }
 0x184   : > { %v472_v47 = vpop.xlane.xlu0 %471 }
 0x185   : > { %v475_v48 = vmul.f32 0.03125, %v472_v47  ;;  %v478_v49 = vmul.f32 %v476_v46, %v476_v46 }
 0x187   : > { %v477_v50 = vsub.f32 %v465_v37, %v475_v48  ;;  %v480_v51 = vsel %vm466_vm2, %v478_v49, 0.0 }
 0x188   : > { %481 = vadd.xlane.f32.xlu1 %v480_v51 }
 0x189   : > { %v479_v52 = vmul.f32 %v477_v50, %v477_v50 }
 0x18b   : > { %v483_v53 = vsel %vm466_vm2, %v479_v52, 0.0 }
 0x18c   : > { %484 = vadd.xlane.f32.xlu1 %v483_v53 }
 0x215   : > { %v482_v60 = vpop.xlane.xlu1 %481 }
 0x216   : > { %v486_v61 = vmul.f32 0.03125, %v482_v60 }
 0x218   : > { %v488_v62 = vadd.f32 1e-05, %v486_v61 }
 0x219   : > { %v485_v63 = vpop.xlane.xlu1 %484 }
 0x21a   : > { %782 = vrsqrt.f32 %v488_v62  ;;  %v487_v0 = vmul.f32 0.03125, %v485_v63 }
 0x21c   : > { %v489_v1 = vadd.f32 1e-05, %v487_v0 }
 0x21e   : > { %784 = vrsqrt.f32 %v489_v1 }
 0x21f   : > { %786 = vpow2.f32 %v729_v13 }
 0x220   : > { %788 = vpow2.f32 %v730_v14 }
 0x224   : > { %v783_v3 = vpop.eup %782 }
 0x225   : > { %v492_v4 = vmul.f32 %v783_v3, %v476_v46 }
 0x227   : > { %v501_v7 = vmul.f32 %v722_v5, %v492_v4 }
 0x228   : > { %v785_v2 = vpop.eup %784 }
 0x229   : > { %v493_v6 = vmul.f32 %v785_v2, %v477_v50  ;;  %v510_v10 = vadd.f32 %v723_v8, %v501_v7  ;;  %v787_v15 = vpop.eup %786 }
 0x22a   : > { %v631_v16 = vadd.f32 1.0, %v787_v15  ;;  %v789_v17 = vpop.eup %788 }
 0x22b   : > { %v502_v9 = vmul.f32 %v722_v5, %v493_v6  ;;  %v632_v18 = vadd.f32 1.0, %v789_v17 }
 0x22c   : > { %790 = vrcp.f32 %v631_v16 }
 0x22d   : > { %v511_v11 = vadd.f32 %v723_v8, %v502_v9  ;;  %792 = vrcp.f32 %v632_v18 }
 0x22f   : > { %v512_v12 = vpack.c.bf16 %v511_v11, %v510_v10 }
 0x231   : > { %759 = vmatmul.mubr.msk.bf16.vlgmr.msra.gmra.mrb[0].mxu1 %vm466_vm2, %v512_v12 }
 0x236   : > { %v791_v19 = vpop.eup %790 }
 0x237   : > { %v793_v23 = vpop.eup %792 }
 0x304   : > { %v566_v20 = vpop.f32.mrb[0].mxu1 }
 0x305   : > { %v637_v21 = vmul.f32 %v791_v19, %v566_v20  ;;  %v760_v22 = vpop.f32.mrb[1].mxu1 }
 0x306   : > { %v569_v24 = vpop.f32.mrb[2].mxu1 }
 0x307   : > { %639 = vst.msk [vmem:[%s356_s19] sm:$0xff] %vm417_vm1, %v637_v21  ;;  %v638_v25 = vmul.f32 %v793_v23, %v569_v24  ;;  %v761_v26 = vpop.f32.mrb[3].mxu1 }
 0x309   : > { %640 = vst.msk [vmem:[%s356_s19 + $0x8] sm:$0xff] %vm417_vm1, %v638_v25 }
 0x30a PF: > { %s19_s30 = sadd.s32 1, %s800_s30  }
 0x30b   : > { %p16_p4 = scmp.ge.s32.totalorder %s19_s30, 4  }
 0x30d   :  { %18 = sbr.rel (!%p16_p4) target bundleno = 1 (0x1), region = 89 }

</bundles_post_ra>
